<compile_context>
chip_gen: v7x
topology: tpu7x:2x2x1
jax: 0.10.0
libtpu: 0.0.40
codegen_flags: <defaults>
</compile_context>

<pallas_src>
from functools import partial

import numpy as np
import jax
import jax.numpy as jnp
from jax import lax
from jax.experimental import pallas as pl
from jax.experimental.pallas import tpu as pltpu


def _round_up(x, m):
    return ((x + m - 1) // m) * m


def _row_tile():
    # MXU issue width: 128 on v2-v5, 256 on v6e/v7x.
    try:
        kind = jax.devices()[0].device_kind.lower()
    except Exception:
        kind = ""
    if any(t in kind for t in ("v2", "v3", "v4", "v5")):
        return 128
    return 256


# ----------------------------------------------------------------------------
# Pallas kernel.
#   fall_ref : (N_pad, D)   bf16  full contrast feature matrix (resident; the
#                                 anchor-row tile is sliced out of it in-kernel,
#                                 so F is only DMA'd once)
#   labc_ref : (TM, 1)      int32 labels of this tile's rows (-1 = padding)
#   labr_ref : (1, N_pad)   int32 labels of all columns (resident)
#   out_ref  : (1, 8, 128)  f32   this tile's (sum of per-row losses) / N,
#                                 broadcast over an (8,128) tile so the store is
#                                 a full unmasked vst and the block is aligned.
# All softmax/log math is f32; only the MXU operands are bf16.
# ----------------------------------------------------------------------------
def _contrastive_kernel(fall_ref, labc_ref, labr_ref, out_ref, *,
                        temperature, base_temperature, n_valid, inv_n):
    tm = labc_ref.shape[0]
    n_pad = fall_ref.shape[0]

    row_start = pl.multiple_of(pl.program_id(0) * tm, tm)
    f_rows = fall_ref[pl.ds(row_start, tm), :]                      # (tm, D) bf16

    # anchor_dot_contrast / T : bf16 operands, f32 accumulation on the MXU.
    logits_raw = lax.dot_general(
        f_rows, fall_ref[...],
        dimension_numbers=(((1,), (1,)), ((), ())),
        preferred_element_type=jnp.float32,
    ) * jnp.float32(1.0 / temperature)                              # (tm, n_pad)

    # Taking the row max over the padded row is safe: padded columns contribute
    # 0, and the shift cancels exactly in the log-softmax below.
    row_max = jnp.max(logits_raw, axis=1, keepdims=True)
    logits = logits_raw - row_max

    # Masks from small iotas ((tm,1) and (1,n_pad)) broadcast against each other;
    # no (tm, n_pad) int32 temporaries are materialized.
    row_ids = row_start + lax.broadcasted_iota(jnp.int32, (tm, 1), 0)
    col_ids = lax.broadcasted_iota(jnp.int32, (1, n_pad), 1)
    col_valid = col_ids < n_valid                                    # (1, n_pad)
    same_cls = labc_ref[...] == labr_ref[...]                        # (tm, n_pad)
    not_diag = row_ids != col_ids
    pos_mask = same_cls & not_diag & col_valid
    neg_mask = jnp.logical_not(same_cls) & col_valid

    e = jnp.exp(logits)
    neg_sum = jnp.sum(jnp.where(neg_mask, e, 0.0), axis=1, keepdims=True)
    # Clamp only guards the regime where the reference itself returns inf/NaN
    # (complete fp32 underflow of every exp term); otherwise it is a no-op.
    denom = jnp.maximum(e + neg_sum, jnp.float32(1e-30))
    log_prob = logits - jnp.log(denom)

    pos_f = pos_mask.astype(jnp.float32)
    pos_sum = jnp.sum(pos_f * log_prob, axis=1, keepdims=True)       # (tm, 1)
    pos_cnt = jnp.sum(pos_f, axis=1, keepdims=True)                  # (tm, 1)

    mean_log_prob_pos = pos_sum * pl.reciprocal(
        jnp.maximum(pos_cnt, 1.0), approx=True)
    per_row = jnp.float32(-(temperature / base_temperature)) * mean_log_prob_pos

    # Padded rows (and degenerate rows with no positives, which would be NaN in
    # the reference) are excluded from the mean.
    row_ok = (row_ids < n_valid) & (pos_cnt > 0.0)
    tile_sum = jnp.sum(jnp.where(row_ok, per_row, 0.0)) * jnp.float32(inv_n)

    out_ref[...] = jnp.full(out_ref.shape, tile_sum, dtype=jnp.float32)


def contrastive_pallas(feats_, labels_, temperature, base_temperature):
    """Pallas version of PixelContrastLoss._contrastive (cls_weights=None)."""
    anchor_num, n_view, d = feats_.shape
    N = anchor_num * n_view

    # contrast_feature = cat(unbind(feats_, dim=1), dim=0): view-major ordering,
    # row i <-> anchor i % anchor_num.
    F = jnp.transpose(jnp.asarray(feats_, jnp.float32), (1, 0, 2)).reshape(N, d)
    lab = jnp.tile(jnp.asarray(labels_).astype(jnp.int32).reshape(-1), (n_view,))

    # Fixed row tile (128 on v5-class, 256 on v6e/v7x); pad N up to a tile multiple.
    n_pad = _round_up(N, 128)
    tm = _row_tile()
    if n_pad % tm != 0:
        tm = 128
    num_tiles = n_pad // tm

    # bf16 operands for the MXU; padded rows are zero, padded labels are -1.
    F_pad = jnp.pad(F.astype(jnp.bfloat16), ((0, n_pad - N), (0, 0)))
    lab_pad = jnp.pad(lab, (0, n_pad - N), constant_values=-1)
    labc = lab_pad.reshape(n_pad, 1)
    labr = lab_pad.reshape(1, n_pad)

    kernel = partial(_contrastive_kernel,
                     temperature=float(temperature),
                     base_temperature=float(base_temperature),
                     n_valid=N, inv_n=1.0 / N)

    partials = pl.pallas_call(
        kernel,
        out_shape=jax.ShapeDtypeStruct((num_tiles, 8, 128), jnp.float32),
        grid_spec=pltpu.PrefetchScalarGridSpec(
            num_scalar_prefetch=0,
            grid=(num_tiles,),
            in_specs=[
                # Full contrast matrix: constant block index -> stays resident;
                # per-tile anchor rows are sliced from it inside the kernel.
                # TODO(synk): pipeline_mode=pl.Buffered(1) would halve its VMEM
                # footprint on v7x; left at the default for portability.  If
                # max_samples ever grows far past 1024, add a second grid axis
                # over the contrast dim with an online-softmax instead of holding
                # the full (tm, N) logits.
                pl.BlockSpec((n_pad, d), lambda i: (0, 0)),
                pl.BlockSpec((tm, 1), lambda i: (i, 0)),     # row-label tile
                pl.BlockSpec((1, n_pad), lambda i: (0, 0)),  # all column labels
            ],
            # One (8,128)-aligned partial-sum block per tile: lane-dense stores,
            # no cross-step carry, so the grid axis stays "parallel" (v7x 2-TC).
            out_specs=pl.BlockSpec((1, 8, 128), lambda i: (i, 0, 0)),
        ),
        compiler_params=pltpu.CompilerParams(
            dimension_semantics=("parallel",),
            vmem_limit_bytes=32 * 1024 * 1024,
        ),
    )(F_pad, labc, labr)

    # Each tile wrote (sum of its per-row losses) / N; total = mean over anchors.
    return jnp.sum(partials[:, 0, 0])


# ----------------------------------------------------------------------------
# Host-side glue (data-dependent shapes, randperm): nearest label resize + hard
# anchor sampling.  Mirrors the PyTorch reference, with a deterministic RNG
# replacing torch.randperm.
# ----------------------------------------------------------------------------
def _nearest_resize_np(lab, out_h, out_w):
    in_h, in_w = lab.shape[-2], lab.shape[-1]
    ri = np.floor(np.arange(out_h) * (in_h / out_h)).astype(np.int64)
    ci = np.floor(np.arange(out_w) * (in_w / out_w)).astype(np.int64)
    return lab[..., ri[:, None], ci[None, :]]


# TODO(synk): _hard_anchor_sampling needs data-dependent output shapes and randperm;
# it stays host-side numpy (the contrastive hot path is the Pallas kernel).
def _hard_anchor_sampling_np(X, y_hat, y, cfg, rng):
    batch_size, feat_dim = X.shape[0], X.shape[-1]
    ignore_label = cfg["IGNORE"]
    max_views = cfg["max_views"]
    max_samples = cfg["max_samples"]
    hard_ratio = cfg.get("hard_ratio", 0.5)

    classes = []
    total_classes = 0
    for ii in range(batch_size):
        this_y = y_hat[ii]
        this_classes = [c for c in np.unique(this_y) if c != ignore_label]
        this_classes = [c for c in this_classes if np.sum(this_y == c) > max_views]
        classes.append(this_classes)
        total_classes += len(this_classes)

    if total_classes == 0:
        return None, None

    n_view = min(max_samples // total_classes, max_views)
    X_ = np.zeros((total_classes, n_view, feat_dim), dtype=np.float32)
    y_ = np.zeros((total_classes,), dtype=np.float32)

    ptr = 0
    for ii in range(batch_size):
        this_y_hat = y_hat[ii]
        this_y = y[ii]
        for cls_id in classes[ii]:
            hard = np.flatnonzero((this_y_hat == cls_id) & (this_y != cls_id))
            easy = np.flatnonzero((this_y_hat == cls_id) & (this_y == cls_id))
            num_hard, num_easy = len(hard), len(easy)
            num_hard_bd = int(hard_ratio * n_view)
            num_easy_bd = n_view - num_hard_bd
            if num_hard >= num_hard_bd and num_easy >= num_easy_bd:
                num_hard_keep = num_hard_bd
                num_easy_keep = n_view - num_hard_keep
            elif num_hard >= num_hard_bd:
                num_easy_keep = num_easy
                num_hard_keep = n_view - num_easy_keep
            elif num_easy >= num_easy_bd:
                num_hard_keep = num_hard
                num_easy_keep = n_view - num_hard_keep
            else:
                raise Exception(
                    "this shoud be never touched! {} {} {}".format(num_hard, num_easy, n_view))
            hard = hard[rng.permutation(num_hard)[:num_hard_keep]]
            easy = easy[rng.permutation(num_easy)[:num_easy_keep]]
            idx = np.concatenate([hard, easy], axis=0)
            X_[ptr] = X[ii, idx, :]
            y_[ptr] = cls_id
            ptr += 1
    return X_, y_


def _prepare_and_sample(feats, labels, predict, cfg, seed=0):
    feats_np = np.asarray(feats, np.float32)          # NCHW
    B, C, H, W = feats_np.shape
    lab = _nearest_resize_np(np.asarray(labels).astype(np.float32), H, W).astype(np.int64)
    assert lab.shape[-1] == W
    lab = lab.reshape(B, -1)
    pred = np.asarray(predict).reshape(B, -1)
    X = np.transpose(feats_np, (0, 2, 3, 1)).reshape(B, -1, C)
    rng = np.random.RandomState(seed)
    return _hard_anchor_sampling_np(X, lab, pred, cfg, rng)


def pixel_contrast_loss(feats, labels, predict, cfg, seed=0):
    """Forward pass of PixelContrastLoss.  feats: NCHW; labels/predict: (B, H, W)."""
    X_, y_ = _prepare_and_sample(feats, labels, predict, cfg, seed)
    if cfg.get("drop_one_class", False) and X_ is not None and len(np.unique(y_)) < 2:
        X_ = None
    if X_ is None:
        return jnp.float32(0.0)
    # TODO(synk): cls_weights path not implemented (reference default is None).
    return contrastive_pallas(jnp.asarray(X_), jnp.asarray(y_),
                              cfg["temperature"], cfg["base_temperature"])


def _contrastive_ref(feats_, labels_, temperature, base_temperature):
    """Pure-JAX f32 mirror of the PyTorch _contrastive (for a self-check)."""
    A, V, D = feats_.shape
    Fm = jnp.transpose(feats_.astype(jnp.float32), (1, 0, 2)).reshape(A * V, D)
    lab = jnp.tile(jnp.asarray(labels_).reshape(-1), (V,))
    mask = (lab[:, None] == lab[None, :]).astype(jnp.float32)
    logits = (Fm @ Fm.T) / temperature
    logits = logits - jnp.max(logits, axis=1, keepdims=True)
    pos = mask * (1.0 - jnp.eye(A * V, dtype=jnp.float32))
    neg = 1.0 - mask
    e = jnp.exp(logits)
    neg_sum = jnp.sum(e * neg, axis=1, keepdims=True)
    log_prob = logits - jnp.log(e + neg_sum)
    mlpp = jnp.sum(pos * log_prob, axis=1) / jnp.sum(pos, axis=1)
    return jnp.mean(-(temperature / base_temperature) * mlpp)


if __name__ == "__main__":
    key = jax.random.PRNGKey(0)
    k1, k2, k3 = jax.random.split(key, 3)

    B, C, H, W = 2, 32, 16, 16          # feats NCHW
    num_classes = 3
    feats = jax.random.normal(k1, (B, C, H, W), dtype=jnp.float32)
    # The loss consumes L2-normalized projection embeddings (cosine similarities),
    # as in the reference training pipeline.
    feats = feats / (jnp.linalg.norm(feats, axis=1, keepdims=True) + 1e-12)
    labels = jax.random.randint(k2, (B, H, W), 0, num_classes)
    predict = jax.random.randint(k3, (B, H, W), 0, num_classes)

    cfg = dict(temperature=0.1, base_temperature=0.07, IGNORE=255,
               max_samples=1024, max_views=16, hard_ratio=0.5, drop_one_class=False)

    loss = pixel_contrast_loss(feats, labels, predict, cfg)
    loss = jax.block_until_ready(loss)
    assert np.isfinite(float(loss)), f"non-finite loss: {loss}"

    # Self-check against a pure-JAX f32 reference on the same sampled anchors
    # (loose tolerance: bf16 MXU operands + approx reciprocal inside the kernel).
    X_, y_ = _prepare_and_sample(feats, labels, predict, cfg, seed=0)
    ref = _contrastive_ref(jnp.asarray(X_), jnp.asarray(y_),
                           cfg["temperature"], cfg["base_temperature"])
    np.testing.assert_allclose(float(loss), float(ref), rtol=8e-2, atol=1e-3)

    print("KERNEL_OK")
</pallas_src>

<mosaic_0001>
module attributes {stable_mosaic.version = 11 : i64} {
  func.func @_contrastive_kernel(%arg0: i32, %arg1: memref<128x32xbf16, #tpu.memory_space<vmem>>, %arg2: memref<128x1xi32, #tpu.memory_space<vmem>>, %arg3: memref<1x128xi32, #tpu.memory_space<vmem>>, %arg4: memref<1x8x128xf32, #tpu.memory_space<vmem>>) attributes {dimension_semantics = [#tpu.dimension_semantics<parallel>], iteration_bounds = array<i64: 1>, scalar_prefetch = 0 : i64, scratch_operands = 0 : i64, tpu.core_type = #tpu.core_type<tc>, window_params = [{pipeline_mode = #tpu.pipeline_mode<synchronous>, transform_indices = @transform_0, window_bounds = array<i64: 128, 32>}, {transform_indices = @transform_1, window_bounds = array<i64: 128, 1>}, {pipeline_mode = #tpu.pipeline_mode<synchronous>, transform_indices = @transform_2, window_bounds = array<i64: 1, 128>}, {transform_indices = @transform_3, window_bounds = array<i64: 1, 8, 128>}]} {
    %c128_i32 = arith.constant 128 : i32
    %0 = arith.muli %arg0, %c128_i32 : i32
    %1 = tpu.assume_multiple %0, 128 : i32
    %2 = arith.index_cast %1 : i32 to index
    %c0 = arith.constant 0 : index
    %3 = vector.load %arg1[%2, %c0] : memref<128x32xbf16, #tpu.memory_space<vmem>>, vector<128x32xbf16>
    %c0_0 = arith.constant 0 : index
    %c0_1 = arith.constant 0 : index
    %4 = vector.load %arg1[%c0_0, %c0_1] : memref<128x32xbf16, #tpu.memory_space<vmem>>, vector<128x32xbf16>
    %cst = arith.constant dense<0.000000e+00> : vector<128x128xf32>
    %5 = tpu.matmul %3, %4, %cst {dimension_numbers = #tpu.dot_dimension_numbers<[1], [1], [0], [0], [0, 0, 1, 0], [], []>} : vector<128x32xbf16>, vector<128x32xbf16>, vector<128x128xf32> -> vector<128x128xf32>
    %cst_2 = arith.constant 1.000000e+01 : f32
    %6 = vector.broadcast %cst_2 : f32 to vector<128x128xf32>
    %7 = arith.mulf %5, %6 : vector<128x128xf32>
    %cst_3 = arith.constant dense<0xFF800000> : vector<128xf32>
    %8 = vector.multi_reduction <maximumf>, %7, %cst_3 [1] : vector<128x128xf32> to vector<128xf32>
    %9 = vector.shape_cast %8 : vector<128xf32> to vector<128x1xf32>
    %10 = vector.broadcast %9 : vector<128x1xf32> to vector<128x128xf32>
    %11 = arith.subf %7, %10 : vector<128x128xf32>
    %12 = tpu.iota {dimensions = array<i32: 0>} : vector<128x1xi32>
    %13 = vector.broadcast %1 : i32 to vector<128x1xi32>
    %14 = arith.addi %13, %12 : vector<128x1xi32>
    %15 = tpu.iota {dimensions = array<i32: 1>} : vector<1x128xi32>
    %c96_i32 = arith.constant 96 : i32
    %16 = vector.broadcast %c96_i32 : i32 to vector<1x128xi32>
    %17 = arith.cmpi slt, %15, %16 : vector<1x128xi32>
    %c0_4 = arith.constant 0 : index
    %c0_5 = arith.constant 0 : index
    %18 = vector.load %arg2[%c0_4, %c0_5] : memref<128x1xi32, #tpu.memory_space<vmem>>, vector<128x1xi32>
    %c0_6 = arith.constant 0 : index
    %c0_7 = arith.constant 0 : index
    %19 = vector.load %arg3[%c0_6, %c0_7] : memref<1x128xi32, #tpu.memory_space<vmem>>, vector<1x128xi32>
    %20 = vector.broadcast %18 : vector<128x1xi32> to vector<128x128xi32>
    %21 = vector.broadcast %19 : vector<1x128xi32> to vector<128x128xi32>
    %22 = arith.cmpi eq, %20, %21 : vector<128x128xi32>
    %23 = vector.broadcast %14 : vector<128x1xi32> to vector<128x128xi32>
    %24 = vector.broadcast %15 : vector<1x128xi32> to vector<128x128xi32>
    %25 = arith.cmpi ne, %23, %24 : vector<128x128xi32>
    %26 = arith.andi %22, %25 : vector<128x128xi1>
    %27 = vector.broadcast %17 : vector<1x128xi1> to vector<128x128xi1>
    %28 = arith.andi %26, %27 : vector<128x128xi1>
    %cst_8 = arith.constant dense<true> : vector<128x128xi1>
    %29 = arith.xori %22, %cst_8 : vector<128x128xi1>
    %30 = vector.broadcast %17 : vector<1x128xi1> to vector<128x128xi1>
    %31 = arith.andi %29, %30 : vector<128x128xi1>
    %32 = math.exp %11 : vector<128x128xf32>
    %cst_9 = arith.constant 0.000000e+00 : f32
    %33 = vector.broadcast %cst_9 : f32 to vector<128x128xf32>
    %34 = arith.select %31, %32, %33 : vector<128x128xi1>, vector<128x128xf32>
    %cst_10 = arith.constant dense<0.000000e+00> : vector<128xf32>
    %35 = vector.multi_reduction <add>, %34, %cst_10 [1] : vector<128x128xf32> to vector<128xf32>
    %36 = vector.shape_cast %35 : vector<128xf32> to vector<128x1xf32>
    %37 = vector.broadcast %36 : vector<128x1xf32> to vector<128x128xf32>
    %38 = arith.addf %32, %37 : vector<128x128xf32>
    %cst_11 = arith.constant 1.000000e-30 : f32
    %39 = vector.broadcast %cst_11 : f32 to vector<128x128xf32>
    %40 = arith.maximumf %38, %39 : vector<128x128xf32>
    %41 = math.log %40 : vector<128x128xf32>
    %42 = arith.subf %11, %41 : vector<128x128xf32>
    %43 = arith.extui %28 : vector<128x128xi1> to vector<128x128xi32>
    %44 = arith.sitofp %43 : vector<128x128xi32> to vector<128x128xf32>
    %45 = arith.mulf %44, %42 : vector<128x128xf32>
    %cst_12 = arith.constant dense<0.000000e+00> : vector<128xf32>
    %46 = vector.multi_reduction <add>, %45, %cst_12 [1] : vector<128x128xf32> to vector<128xf32>
    %47 = vector.shape_cast %46 : vector<128xf32> to vector<128x1xf32>
    %cst_13 = arith.constant dense<0.000000e+00> : vector<128xf32>
    %48 = vector.multi_reduction <add>, %44, %cst_13 [1] : vector<128x128xf32> to vector<128xf32>
    %49 = vector.shape_cast %48 : vector<128xf32> to vector<128x1xf32>
    %cst_14 = arith.constant 1.000000e+00 : f32
    %50 = vector.broadcast %cst_14 : f32 to vector<128x1xf32>
    %51 = arith.maximumf %49, %50 : vector<128x1xf32>
    %52 = tpu.reciprocal %51 {approx = true} : vector<128x1xf32> -> vector<128x1xf32>
    %53 = arith.mulf %47, %52 : vector<128x1xf32>
    %cst_15 = arith.constant -1.42857146 : f32
    %54 = vector.broadcast %cst_15 : f32 to vector<128x1xf32>
    %55 = arith.mulf %54, %53 : vector<128x1xf32>
    %c96_i32_16 = arith.constant 96 : i32
    %56 = vector.broadcast %c96_i32_16 : i32 to vector<128x1xi32>
    %57 = arith.cmpi slt, %14, %56 : vector<128x1xi32>
    %cst_17 = arith.constant 0.000000e+00 : f32
    %58 = vector.broadcast %cst_17 : f32 to vector<128x1xf32>
    %59 = arith.cmpf ogt, %49, %58 : vector<128x1xf32>
    %60 = arith.andi %57, %59 : vector<128x1xi1>
    %cst_18 = arith.constant 0.000000e+00 : f32
    %61 = vector.broadcast %cst_18 : f32 to vector<128x1xf32>
    %62 = arith.select %60, %55, %61 : vector<128x1xi1>, vector<128x1xf32>
    %63 = vector.shape_cast %62 : vector<128x1xf32> to vector<1x128x1xf32>
    %cst_19 = arith.constant dense<0.000000e+00> : vector<1xf32>
    %64 = vector.multi_reduction <add>, %63, %cst_19 [1, 2] : vector<1x128x1xf32> to vector<1xf32>
    %65 = vector.shape_cast %64 : vector<1xf32> to vector<1x1x1xf32>
    %66 = vector.extract %65[0, 0, 0] : f32 from vector<1x1x1xf32>
    %cst_20 = arith.constant 0.010416667 : f32
    %67 = arith.mulf %66, %cst_20 : f32
    %68 = vector.broadcast %67 : f32 to vector<1x8x128xf32>
    %c0_21 = arith.constant 0 : index
    %c0_22 = arith.constant 0 : index
    %c0_23 = arith.constant 0 : index
    %69 = vector.load %arg4[%c0_21, %c0_22, %c0_23] : memref<1x8x128xf32, #tpu.memory_space<vmem>>, vector<1x8x128xf32>
    tpu.vector_store %arg4[%c0_21, %c0_22, %c0_23], %68 {strides = array<i32>} : memref<1x8x128xf32, #tpu.memory_space<vmem>>, vector<1x8x128xf32>,
    return
  }
  func.func @transform_0(%arg0: i32) -> (i32, i32) {
    %c0_i32 = arith.constant 0 : i32
    %c0_i32_0 = arith.constant 0 : i32
    %c0_i32_1 = arith.constant 0 : i32
    return %c0_i32, %c0_i32_0 : i32, i32
  }
  func.func @transform_1(%arg0: i32) -> (i32, i32) {
    %c0_i32 = arith.constant 0 : i32
    %c0_i32_0 = arith.constant 0 : i32
    return %arg0, %c0_i32 : i32, i32
  }
  func.func @transform_2(%arg0: i32) -> (i32, i32) {
    %c0_i32 = arith.constant 0 : i32
    %c0_i32_0 = arith.constant 0 : i32
    %c0_i32_1 = arith.constant 0 : i32
    return %c0_i32, %c0_i32_0 : i32, i32
  }
  func.func @transform_3(%arg0: i32) -> (i32, i32, i32) {
    %c0_i32 = arith.constant 0 : i32
    %c0_i32_0 = arith.constant 0 : i32
    %c0_i32_1 = arith.constant 0 : i32
    return %arg0, %c0_i32, %c0_i32_0 : i32, i32, i32
  }
}

</mosaic_0001>

<bundles_post_ra>
// kernel: tpu_custom_call.1
= control target key start
LH: loop header
LB: loop body
LE: loop exit
PB: predicated region body
PF: predicated region fallthrough
CT: control target
= control target key end

     0   :  { %vm1891_vm0 = vcmask 261120   ;;  %v1248_v3 = vmov 0   ;;  %s1887_s0 = inlined_call_operand.vmem [shape: bf16[128,32], index: 0, kind: input, shape index: {}]   ;;  %s1888_s1 = inlined_call_operand.vmem [shape: s32[128,1], index: 1, kind: input, shape index: {}]   ;;  %s1889_s2 = inlined_call_operand.vmem [shape: s32[1,128], index: 2, kind: input, shape index: {}]   ;;  %s1890_s3 = inlined_call_operand.hbm [shape: f32[1,8,128], index: 3, kind: output, shape index: {}]  }
   0x1   :  { %v1136_v0 = vld [vmem:[%s1887_s0] sm:$0xff]   ;;  %v1137_v1 = vld [vmem:[%s1887_s0 + $0x8] sm:$0xff]   ;;  %1135 = vset.pattern.permute.xlu0 %v1248_v3  ;;  %1134 = vset.pattern.permute.xlu1 %v1248_v3  ;;  %v1138_v4 = vld [vmem:[%s1887_s0 + $0x10] sm:$0xff]  }
   0x2   :  { %1112 = vmatprep.subr.msk.bf16.mxu0 %vm1891_vm0, %v1136_v0  ;;  %1113 = vmatprep.subr.msk.bf16.mxu1 %vm1891_vm0, %v1136_v0  ;;  %v159_v2 = vsel %vm1891_vm0, %v1136_v0, 0  ;;  %v162_v5 = vsel %vm1891_vm0, %v1137_v1, 0  ;;  %v1144_v6 = vld [vmem:[%s1887_s0] sm:$0xff]   ;;  %v381_v8 = vld [vmem:[%s1888_s1 + $0x8] sm:$0xff]  ;;  %v165_v9 = vsel %vm1891_vm0, %v1138_v4, 0  ;;  %v1139_v10 = vld [vmem:[%s1887_s0 + $0x18] sm:$0xff]  }
   0x3   :  { %1065 = vmatpush3.bf16.xpose.msra.mxu0 %v159_v2  ;;  %1104 = vmatpush3.bf16.xpose.msra.mxu1 %v159_v2  ;;  %v1145_v7 = vld [vmem:[%s1887_s0 + $0x20] sm:$0xff]   ;;  %v382_v11 = vld [vmem:[%s1888_s1 + $0x10] sm:$0xff] }
   0x4   :  { %1114 = vmatprep.subr.msk.bf16.mxu0 %vm1891_vm0, %v1137_v1  ;;  %1115 = vmatprep.subr.msk.bf16.mxu1 %vm1891_vm0, %v1137_v1  ;;  %v380_v12 = vld [vmem:[%s1888_s1] sm:$0xff] }
   0x5   :  { %1080 = vmatprep.mubr.msk.bf16.mxu0 %vm1891_vm0, %v1144_v6  ;;  %1088 = vmatprep.mubr.msk.bf16.mxu1 %vm1891_vm0, %v1145_v7  ;;  %v384_v13 = vld [vmem:[%s1888_s1 + $0x20] sm:$0xff] }
   0x6   :  { %401 = vperm.xlu0 %1135, %v381_v8   ;;  %398 = vperm.xlu1 %1134, %v380_v12  }
   0xb   :  { %1067 = vmatpush3.bf16.xpose.msra.mxu0 %v162_v5  ;;  %1105 = vmatpush3.bf16.xpose.msra.mxu1 %v162_v5 }
   0xc   :  { %1116 = vmatprep.subr.msk.bf16.mxu0 %vm1891_vm0, %v1138_v4  ;;  %1117 = vmatprep.subr.msk.bf16.mxu1 %vm1891_vm0, %v1138_v4 }
   0xd   :  { %8 = vsyncpa [#allocation3], 0  ;;  %404 = vperm.xlu0 %1135, %v382_v11   ;;  %410 = vperm.xlu1 %1134, %v384_v13   ;;  %v383_v14 = vld [vmem:[%s1888_s1 + $0x18] sm:$0xff]  ;;  %v389_v15 = vld [vmem:[%s1888_s1 + $0x48] sm:$0xff]  ;;  %v168_v16 = vsel %vm1891_vm0, %v1139_v10, 0  ;;  %vm1249_vm2 = vmmov 1  }
   0xe   :  { %v1140_v17 = vld [vmem:[%s1887_s0 + $0x20] sm:$0xff]   ;;  %v385_v18 = vld [vmem:[%s1888_s1 + $0x28] sm:$0xff]  ;;  %v386_v19 = vld [vmem:[%s1888_s1 + $0x30] sm:$0xff] }
   0xf   :  { %v171_v20 = vsel %vm1891_vm0, %v1140_v17, 0  ;;  %v1141_v21 = vld [vmem:[%s1887_s0 + $0x28] sm:$0xff]   ;;  %v387_v22 = vld [vmem:[%s1888_s1 + $0x38] sm:$0xff]  ;;  %v388_v23 = vld [vmem:[%s1888_s1 + $0x40] sm:$0xff] }
  0x10   :  { %v174_v24 = vsel %vm1891_vm0, %v1141_v21, 0  ;;  %v1142_v25 = vld [vmem:[%s1887_s0 + $0x30] sm:$0xff]   ;;  %v1143_v27 = vld [vmem:[%s1887_s0 + $0x38] sm:$0xff]   ;;  %v1146_v29 = vld [vmem:[%s1887_s0 + $0x8] sm:$0xff]  }
  0x11   :  { %407 = vperm.xlu0 %1135, %v383_v14   ;;  %425 = vperm.xlu1 %1134, %v389_v15   ;;  %v177_v26 = vsel %vm1891_vm0, %v1142_v25, 0  ;;  %v180_v28 = vsel %vm1891_vm0, %v1143_v27, 0  ;;  %v1147_v30 = vld [vmem:[%s1887_s0 + $0x28] sm:$0xff]   ;;  %v1148_v31 = vld [vmem:[%s1887_s0 + $0x10] sm:$0xff]   ;;  %v1149_v32 = vld [vmem:[%s1887_s0 + $0x18] sm:$0xff]  }
  0x12   :  { %v391_v57 = vld [vmem:[%s1888_s1 + $0x58] sm:$0xff]  ;;  %v390_v58 = vld [vmem:[%s1888_s1 + $0x50] sm:$0xff] }
  0x13   :  { %1069 = vmatpush3.bf16.xpose.msra.mxu0 %v165_v9  ;;  %1106 = vmatpush3.bf16.xpose.msra.mxu1 %v165_v9 }
  0x14   :  { %1118 = vmatprep.subr.msk.bf16.mxu0 %vm1891_vm0, %v1139_v10  ;;  %1119 = vmatprep.subr.msk.bf16.mxu1 %vm1891_vm0, %v1139_v10 }
  0x15   :  { %413 = vperm.xlu0 %1135, %v385_v18   ;;  %v343_v18 = vlaneseq }
  0x19   :  { %416 = vperm.xlu0 %1135, %v386_v19  }
  0x1b   :  { %1071 = vmatpush3.bf16.xpose.msra.mxu0 %v168_v16  ;;  %1107 = vmatpush3.bf16.xpose.msra.mxu1 %v168_v16 }
  0x1c   :  { %1120 = vmatprep.subr.msk.bf16.mxu0 %vm1891_vm0, %v1140_v17  ;;  %1121 = vmatprep.subr.msk.bf16.mxu1 %vm1891_vm0, %v1140_v17  ;;  %v1426_v17 = vld [vmem:[%s1889_s2] ss:$0 sm:$0xff] }
  0x1d   :  { %419 = vperm.xlu0 %1135, %v387_v22   ;;  %v1433_v22 = vand.u32 127, %v343_v18 }
  0x1f   :  { %vm379_vm5 = vcmp.lt.s32.totalorder %v1433_v22, 96 }
  0x21   :  { %422 = vperm.xlu0 %1135, %v388_v23  }
  0x23   :  { %1073 = vmatpush3.bf16.xpose.msra.mxu0 %v171_v20  ;;  %1108 = vmatpush3.bf16.xpose.msra.mxu1 %v171_v20 }
  0x24   :  { %1122 = vmatprep.subr.msk.bf16.mxu0 %vm1891_vm0, %v1141_v21  ;;  %1123 = vmatprep.subr.msk.bf16.mxu1 %vm1891_vm0, %v1141_v21 }
  0x2b   :  { %1075 = vmatpush3.bf16.xpose.msra.mxu0 %v174_v24  ;;  %1109 = vmatpush3.bf16.xpose.msra.mxu1 %v174_v24 }
  0x2c   :  { %1124 = vmatprep.subr.msk.bf16.mxu0 %vm1891_vm0, %v1142_v25  ;;  %1125 = vmatprep.subr.msk.bf16.mxu1 %vm1891_vm0, %v1142_v25 }
  0x33   :  { %1077 = vmatpush3.bf16.xpose.msra.mxu0 %v177_v26  ;;  %1110 = vmatpush3.bf16.xpose.msra.mxu1 %v177_v26 }
  0x34   :  { %1126 = vmatprep.subr.msk.bf16.mxu0 %vm1891_vm0, %v1143_v27  ;;  %1127 = vmatprep.subr.msk.bf16.mxu1 %vm1891_vm0, %v1143_v27 }
  0x3b   :  { %1079 = vmatpush3.bf16.xpose.msra.mxu0 %v180_v28  ;;  %1111 = vmatpush3.bf16.xpose.msra.mxu1 %v180_v28 }
  0x42   :  { %1081 = vmatmul.mubr.msk.bf16.vlgmr.msra.gmra.mrb[0].mxu0 %vm1891_vm0, %v1146_v29  ;;  %1089 = vmatmul.mubr.msk.bf16.vlgmr.msra.gmra.mrb[0].mxu1 %vm1891_vm0, %v1147_v30 }
  0x43   :  { %1084 = vmatprep.mubr.msk.bf16.mxu0 %vm1891_vm0, %v1148_v31 }
  0x4a   :  { %1085 = vmatmul.mubr.msk.bf16.gmra.mrb[4].mxu0 %vm1891_vm0, %v1149_v32 }
  0x85   :  { %v1392_v59 = vpop.permute.xlu0 %401  ;;  %v1402_v0 = vpop.permute.xlu1 %398 }
  0x86   :  { %vm449_vm1 = vcmp.eq.s32.totalorder %v1402_v0, %v1426_v17  ;;  %vm450_vm9 = vcmp.eq.s32.totalorder %v1392_v59, %v1426_v17 }
  0x87   :  { %vm515_vm3 = vmxor %vm449_vm1, %vm1249_vm2 }
  0x88   :  { %vm531_vm6 = vmand %vm515_vm3, %vm379_vm5 }
  0x89   :  { %vm516_vm12 = vmxor %vm450_vm9, %vm1249_vm2 }
  0x8a   :  { %vm532_vm15 = vmand %vm516_vm12, %vm379_vm5 }
  0x8c   :  { %v1394_v60 = vpop.permute.xlu0 %404  ;;  %v1406_v2 = vpop.permute.xlu1 %410 }
  0x8d   :  { %vm451_vm4 = vcmp.eq.s32.totalorder %v1394_v60, %v1426_v17  ;;  %vm1895_vm14 = vcmp.eq.s32.totalorder %v1406_v2, %v1426_v17 }
  0x8e   :  { %vm1453_vm7 = vmxor %vm451_vm4, %vm1249_vm2 }
  0x8f   :  { %vm533_vm10 = vmand %vm1453_vm7, %vm379_vm5 }
  0x90   :  { %v1396_v61 = vpop.permute.xlu0 %407  ;;  %v1410_v4 = vpop.permute.xlu1 %425 }
  0x91   :  { %vm452_vm8 = vcmp.eq.s32.totalorder %v1396_v61, %v1426_v17 }
  0x92   :  { %vm518_vm11 = vmxor %vm452_vm8, %vm1249_vm2 }
  0x93   :  { %vm534_vm13 = vmand %vm518_vm11, %vm379_vm5 }
  0x94   :  { %v1398_v62 = vpop.permute.xlu0 %413 }
  0x95   :  { %vm1893_vm3 = vcmp.eq.s32.totalorder %v1398_v62, %v1426_v17 }
  0x96   :  { %vm1528_vm11 = vmxor %vm1893_vm3, %vm1249_vm2 }
  0x98   :  { %v1400_v63 = vpop.permute.xlu0 %416 }
  0x99   :  { %vm1894_vm7 = vcmp.eq.s32.totalorder %v1400_v63, %v1426_v17 }
  0x9c   :  { %v1404_v1 = vpop.permute.xlu0 %419 }
  0xa0   :  { %v1408_v3 = vpop.permute.xlu0 %422 }
  0xa1   :  { %vm1896_vm0 = vcmp.eq.s32.totalorder %v1408_v3, %v1426_v17 }
 0x115   :  { %v1082_v33 = vpop.f32.mrb[0].mxu0  ;;  %v1090_v34 = vpop.f32.mrb[0].mxu1 }
 0x116   :  { %v281_v35 = vmul.f32 10.0, %v1082_v33  ;;  %v1374_v36 = vmul.f32 10.0, %v1090_v34  ;;  %v216_v37 = vpop.f32.mrb[1].mxu0  ;;  %v248_v38 = vpop.f32.mrb[1].mxu1 }
 0x117   :  { %v1083_v39 = vpop.f32.mrb[2].mxu0  ;;  %v1091_v40 = vpop.f32.mrb[2].mxu1  ;;  %v279_v41 = vmul.f32 10.0, %v216_v37  ;;  %v1377_v46 = vmul.f32 10.0, %v248_v38 }
 0x118   :  { %v282_v42 = vmul.f32 10.0, %v1083_v39  ;;  %315 = vmax.xlane.f32.xlu0 %v1374_v36  ;;  %v251_v43 = vpop.f32.mrb[3].mxu1  ;;  %299 = vmax.xlane.f32.xlu1 %v281_v35  ;;  %v219_v44 = vpop.f32.mrb[3].mxu0  ;;  %v1379_v47 = vmul.f32 10.0, %v1091_v40 }
 0x119   :  { %v1383_v51 = vmul.f32 10.0, %v251_v43  ;;  %v280_v52 = vmul.f32 10.0, %v219_v44 }
 0x11c   :  { %295 = vmax.xlane.f32.xlu0 %v279_v41  ;;  %301 = vmax.xlane.f32.xlu1 %v282_v42 }
 0x11d   :  { %v1086_v45 = vpop.f32.mrb[4].mxu0 }
 0x11e   :  { %v232_v48 = vpop.f32.mrb[5].mxu0  ;;  %v285_v53 = vmul.f32 10.0, %v1086_v45 }
 0x11f   :  { %v1087_v49 = vpop.f32.mrb[6].mxu0  ;;  %v283_v55 = vmul.f32 10.0, %v232_v48 }
 0x120   :  { %311 = vmax.xlane.f32.xlu0 %v1377_v46  ;;  %317 = vmax.xlane.f32.xlu1 %v1379_v47  ;;  %v235_v50 = vpop.f32.mrb[7].mxu0  ;;  %v286_v54 = vmul.f32 10.0, %v1087_v49 }
 0x121   :  { %v284_v56 = vmul.f32 10.0, %v235_v50 }
 0x124   :  { %313 = vmax.xlane.f32.xlu1 %v1383_v51  ;;  %297 = vmax.xlane.f32.xlu0 %v280_v52 }
 0x128   :  { %307 = vmax.xlane.f32.xlu0 %v285_v53  ;;  %309 = vmax.xlane.f32.xlu1 %v286_v54 }
 0x12c   :  { %303 = vmax.xlane.f32.xlu0 %v283_v55  ;;  %305 = vmax.xlane.f32.xlu1 %v284_v56 }
 0x13d   :  { %431 = vperm.xlu1 %1134, %v391_v57  }
 0x142   :  { %428 = vperm.xlu0 %1135, %v390_v58  }
 0x1a5   :  { %v1412_v5 = vpop.xlane.xlu0 %315  ;;  %v300_v6 = vpop.xlane.xlu1 %299 }
 0x1a6   :  { %v1414_v7 = vsub.f32 %v281_v35, %v300_v6  ;;  %v1510_v50 = vsub.f32 %v1374_v36, %v1412_v5 }
 0x1a8   :  { %v551_v11 = vmul.f32 1.442695, %v1414_v7 }
 0x1a9   :  { %v296_v8 = vpop.xlane.xlu0 %295  ;;  %v302_v9 = vpop.xlane.xlu1 %301 }
 0x1aa   :  { %v1416_v10 = vsub.f32 %v279_v41, %v296_v8  ;;  %v1420_v13 = vsub.f32 %v282_v42, %v302_v9 }
 0x1ac   :  { %v547_v12 = vmul.f32 1.442695, %v1416_v10  ;;  %v553_v16 = vmul.f32 1.442695, %v1420_v13 }
 0x1ad   :  { %v312_v14 = vpop.xlane.xlu0 %311  ;;  %v318_v15 = vpop.xlane.xlu1 %317 }
 0x1ae   :  { %1152 = vpow2.f32 %v547_v12  ;;  %v1471_v37 = vsub.f32 %v1377_v46, %v312_v14 }
 0x1af   :  { %1154 = vpow2.f32 %v551_v11 }
 0x1b0   :  { %1156 = vpow2.f32 %v553_v16  ;;  %v563_v45 = vmul.f32 1.442695, %v1471_v37 }
 0x1b1   :  { %v314_v19 = vpop.xlane.xlu1 %313  ;;  %v298_v20 = vpop.xlane.xlu0 %297 }
 0x1b2   :  { %v1430_v21 = vsub.f32 %v280_v52, %v298_v20  ;;  %v1485_v41 = vsub.f32 %v1383_v51, %v314_v19  ;;  %v1516_v52 = vsub.f32 %v1379_v47, %v318_v15  ;;  %v1533_v47 = vshrl.u32 %v343_v18, 7 }
 0x1b4   :  { %v549_v23 = vmul.f32 1.442695, %v1430_v21  ;;  %v565_v48 = vmul.f32 1.442695, %v1485_v41  ;;  %v345_v16 = vadd.s32 8, %v1533_v47  ;;  %v346_v19 = vadd.s32 16, %v1533_v47 }
 0x1b5   :  { %v308_v24 = vpop.xlane.xlu0 %307  ;;  %v310_v25 = vpop.xlane.xlu1 %309  ;;  %v348_v28 = vadd.s32 32, %v1533_v47  ;;  %v351_v60 = vadd.s32 56, %v1533_v47  ;;  %v352_v61 = vadd.s32 64, %v1533_v47 }
 0x1b6   :  { %1158 = vpow2.f32 %v549_v23  ;;  %v1445_v27 = vsub.f32 %v285_v53, %v308_v24  ;;  %v1457_v29 = vsub.f32 %v286_v54, %v310_v25  ;;  %v567_v54 = vmul.f32 1.442695, %v1510_v50 }
 0x1b7   :  { %v347_v24 = vadd.s32 24, %v1533_v47 }
 0x1b8   :  { %v1443_v26 = vpop.eup %1152  ;;  %v559_v38 = vmul.f32 1.442695, %v1445_v27  ;;  %v561_v42 = vmul.f32 1.442695, %v1457_v29 }
 0x1b9   :  { %v304_v30 = vpop.xlane.xlu0 %303  ;;  %v306_v31 = vpop.xlane.xlu1 %305  ;;  %v579_v32 = vsel %vm531_vm6, %v1443_v26, 0.0  ;;  %vm1892_vm6 = vcmp.eq.s32.totalorder %v1410_v4, %v1426_v17 }
 0x1ba   :  { %v1460_v33 = vpop.eup %1154  ;;  %v1464_v34 = vsub.f32 %v283_v55, %v304_v30  ;;  %v1466_v35 = vsub.f32 %v284_v56, %v306_v31  ;;  %595 = vadd.xlane.f32.xlu0 %v579_v32  ;;  %vm1539_vm12 = vmxor %vm1892_vm6, %vm1249_vm2  ;;  %v569_v56 = vmul.f32 1.442695, %v1516_v52  ;;  %vm465_vm6 = vcmp.ne.s32.totalorder %v1533_v47, %v1433_v22 }
 0x1bb   :  { %v581_v43 = vsel %vm533_vm10, %v1460_v33, 0.0  ;;  %v1489_v44 = vpop.eup %1156  ;;  %vm519_vm10 = vmxor %vm1895_vm14, %vm1249_vm2 }
 0x1bc   :  { %v555_v39 = vmul.f32 1.442695, %v1464_v34  ;;  %v557_v40 = vmul.f32 1.442695, %v1466_v35  ;;  %v582_v49 = vsel %vm534_vm13, %v1489_v44, 0.0  ;;  %vm1548_vm13 = vmxor %vm1894_vm7, %vm1249_vm2 }
 0x1bd   :  { %vm535_vm3 = vmand %vm519_vm10, %vm379_vm5  ;;  %v1582_v11 = vpop.permute.xlu1 %431 }
 0x1be   :  { %1160 = vpow2.f32 %v555_v39  ;;  %599 = vadd.xlane.f32.xlu0 %v581_v43  ;;  %vm536_vm7 = vmand %vm1528_vm11, %vm379_vm5  ;;  %v349_v39 = vadd.s32 40, %v1533_v47 }
 0x1bf   :  { %1162 = vpow2.f32 %v557_v40  ;;  %vm1594_vm10 = vmand %vm449_vm1, %vm465_vm6 }
 0x1c0   :  { %1164 = vpow2.f32 %v559_v38  ;;  %v1498_v46 = vpop.eup %1158 }
 0x1c1   :  { %1166 = vpow2.f32 %v561_v42  ;;  %v580_v51 = vsel %vm532_vm15, %v1498_v46, 0.0  ;;  %vm456_vm15 = vcmp.eq.s32.totalorder %v1404_v1, %v1426_v17  ;;  %v1565_v5 = vpop.permute.xlu0 %428  ;;  %v350_v42 = vadd.s32 48, %v1533_v47 }
 0x1c2   :  { %601 = vadd.xlane.f32.xlu0 %v582_v49  ;;  %597 = vadd.xlane.f32.xlu1 %v580_v51  ;;  %1168 = vpow2.f32 %v563_v45  ;;  %vm1578_vm14 = vmxor %vm456_vm15, %vm1249_vm2  ;;  %vm459_vm11 = vcmp.eq.s32.totalorder %v1565_v5, %v1426_v17  ;;  %v1250_v45 = vmov 0.0  }
 0x1c3   :  { %1170 = vpow2.f32 %v565_v48  ;;  %vm538_vm1 = vmand %vm1578_vm14, %vm379_vm5 }
 0x1c4   :  { %1172 = vpow2.f32 %v567_v54 }
 0x1c5   :  { %1174 = vpow2.f32 %v569_v56 }
 0x1c8   :  { %v1555_v57 = vpop.eup %1160 }
 0x1c9   :  { %v1563_v58 = vpop.eup %1162  ;;  %v583_v6 = vsel %vm535_vm3, %v1555_v57, 0.0  ;;  %vm523_vm3 = vmxor %vm1896_vm0, %vm1249_vm2  ;;  %vm1897_vm0 = vcmp.eq.s32.totalorder %v1582_v11, %v1426_v17 }
 0x1ca   :  { %v1572_v8 = vpop.eup %1164  ;;  %603 = vadd.xlane.f32.xlu1 %v583_v6  ;;  %v584_v12 = vsel %vm536_vm7, %v1563_v58, 0.0  ;;  %vm537_vm7 = vmand %vm1548_vm13, %vm379_vm5 }
 0x1cb   :  { %v1585_v14 = vpop.eup %1166  ;;  %605 = vadd.xlane.f32.xlu0 %v584_v12  ;;  %v585_v0 = vsel %vm537_vm7, %v1572_v8, 0.0  ;;  %vm539_vm6 = vmand %vm523_vm3, %vm379_vm5  ;;  %vm466_vm7 = vcmp.ne.s32.totalorder %v345_v16, %v1433_v22 }
 0x1cc   :  { %v1612_v18 = vpop.eup %1168  ;;  %v586_v20 = vsel %vm538_vm1, %v1585_v14, 0.0  ;;  %vm525_vm13 = vmxor %vm459_vm11, %vm1249_vm2  ;;  %vm467_vm1 = vcmp.ne.s32.totalorder %v346_v19, %v1433_v22 }
 0x1cd   :  { %v1618_v23 = vpop.eup %1170  ;;  %vm526_vm14 = vmxor %vm1897_vm0, %vm1249_vm2  ;;  %v587_v25 = vsel %vm539_vm6, %v1612_v18, 0.0 }
 0x1ce   :  { %607 = vadd.xlane.f32.xlu1 %v585_v0  ;;  %vm540_vm3 = vmand %vm1539_vm12, %vm379_vm5  ;;  %v1642_v31 = vpop.eup %1172 }
 0x1cf   :  { %609 = vadd.xlane.f32.xlu0 %v586_v20  ;;  %v588_v30 = vsel %vm540_vm3, %v1618_v23, 0.0  ;;  %vm541_vm2 = vmand %vm525_vm13, %vm379_vm5  ;;  %v1647_v32 = vpop.eup %1174  ;;  %vm468_vm13 = vcmp.ne.s32.totalorder %v347_v24, %v1433_v22  ;;  %vm470_vm3 = vcmp.ne.s32.totalorder %v349_v39, %v1433_v22 }
 0x1d0   :  { %vm542_vm0 = vmand %vm526_vm14, %vm379_vm5  ;;  %v589_v40 = vsel %vm541_vm2, %v1642_v31, 0.0  ;;  %vm469_vm14 = vcmp.ne.s32.totalorder %v348_v28, %v1433_v22 }
 0x1d1   :  { %vm482_vm12 = vmand %vm450_vm9, %vm466_vm7  ;;  %v590_v59 = vsel %vm542_vm0, %v1647_v32, 0.0  ;;  %vm1912_vm0 = vcmp.eq.s32.totalorder %v1406_v2, %v1426_v17 }
 0x1d2   :  { %611 = vadd.xlane.f32.xlu1 %v587_v25  ;;  %vm1652_vm6 = vmand %vm451_vm4, %vm467_vm1  ;;  %v354_v25 = vadd.s32 80, %v1533_v47 }
 0x1d3   :  { %613 = vadd.xlane.f32.xlu0 %v588_v30  ;;  %vm499_vm4 = vmand %vm1594_vm10, %vm379_vm5  ;;  %vm471_vm10 = vcmp.ne.s32.totalorder %v350_v42, %v1433_v22  ;;  %v355_v30 = vadd.s32 88, %v1533_v47 }
 0x1d4   :  { %vm500_vm9 = vmand %vm482_vm12, %vm379_vm5  ;;  %v1681_v48 = vsel %vm499_vm4, 1.0, %v1250_v45  ;;  %vm1915_vm12 = vcmp.eq.s32.totalorder %v1398_v62, %v1426_v17  ;;  %v353_v62 = vadd.s32 72, %v1533_v47 }
 0x1d5   :  { %vm484_vm7 = vmand %vm452_vm8, %vm468_vm13  ;;  %v1687_v49 = vsel %vm500_vm9, 1.0, %v1250_v45  ;;  %vm472_vm9 = vcmp.ne.s32.totalorder %v351_v60, %v1433_v22 }
 0x1d6   :  { %615 = vadd.xlane.f32.xlu1 %v589_v40  ;;  %vm1676_vm1 = vmand %vm1912_vm0, %vm469_vm14  ;;  %vm1916_vm14 = vcmp.eq.s32.totalorder %v1400_v63, %v1426_v17 }
 0x1d7   :  { %617 = vadd.xlane.f32.xlu0 %v590_v59  ;;  %vm501_vm8 = vmand %vm1652_vm6, %vm379_vm5  ;;  %vm473_vm6 = vcmp.ne.s32.totalorder %v352_v61, %v1433_v22 }
 0x1d8   :  { %vm502_vm2 = vmand %vm484_vm7, %vm379_vm5  ;;  %v1708_v51 = vsel %vm501_vm8, 1.0, %v1250_v45 }
 0x1d9   :  { %vm486_vm13 = vmand %vm1915_vm12, %vm470_vm3  ;;  %v1713_v36 = vsel %vm502_vm2, 1.0, %v1250_v45  ;;  %vm474_vm2 = vcmp.ne.s32.totalorder %v353_v62, %v1433_v22 }
 0x1da   :  { %787 = vadd.xlane.f32.xlu1 %v1681_v48  ;;  %vm1702_vm4 = vmand %vm1916_vm14, %vm471_vm10  ;;  %vm1919_vm10 = vcmp.eq.s32.totalorder %v1408_v3, %v1426_v17 }
 0x1db   :  { %789 = vadd.xlane.f32.xlu0 %v1687_v49  ;;  %vm503_vm7 = vmand %vm1676_vm1, %vm379_vm5 }
 0x1dc   :  { %vm504_vm3 = vmand %vm486_vm13, %vm379_vm5  ;;  %v1730_v63 = vsel %vm503_vm7, 1.0, %v1250_v45  ;;  %vm1920_vm13 = vcmp.eq.s32.totalorder %v1410_v4, %v1426_v17  ;;  %vm476_vm7 = vcmp.ne.s32.totalorder %v355_v30, %v1433_v22 }
 0x1dd   :  { %vm488_vm0 = vmand %vm456_vm15, %vm472_vm9  ;;  %v1734_v53 = vsel %vm504_vm3, 1.0, %v1250_v45  ;;  %vm475_vm9 = vcmp.ne.s32.totalorder %v354_v25, %v1433_v22 }
 0x1de   :  { %791 = vadd.xlane.f32.xlu1 %v1708_v51  ;;  %vm489_vm8 = vmand %vm1919_vm10, %vm473_vm6 }
 0x1df   :  { %793 = vadd.xlane.f32.xlu0 %v1713_v36  ;;  %vm505_vm1 = vmand %vm1702_vm4, %vm379_vm5 }
 0x1e0   :  { %vm506_vm15 = vmand %vm488_vm0, %vm379_vm5  ;;  %v1745_v1 = vsel %vm505_vm1, 1.0, %v1250_v45 }
 0x1e1   :  { %v1749_v3 = vsel %vm506_vm15, 1.0, %v1250_v45  ;;  %vm507_vm12 = vmand %vm489_vm8, %vm379_vm5  ;;  %vm947_vm15 = vcmask 7168  }
 0x1e2   :  { %795 = vadd.xlane.f32.xlu1 %v1730_v63  ;;  %vm490_vm14 = vmand %vm1920_vm13, %vm474_vm2  ;;  %v1758_v54 = vsel %vm507_vm12, 1.0, %v1250_v45 }
 0x1e3   :  { %797 = vadd.xlane.f32.xlu0 %v1734_v53  ;;  %vm508_vm4 = vmand %vm490_vm14, %vm379_vm5 }
 0x1e4   :  { %v1764_v55 = vsel %vm508_vm4, 1.0, %v1250_v45  ;;  %vm491_vm6 = vmand %vm459_vm11, %vm475_vm9  ;;  %vm1921_vm11 = vcmp.eq.s32.totalorder %v1582_v11, %v1426_v17 }
 0x1e5   :  { %vm509_vm3 = vmand %vm491_vm6, %vm379_vm5 }
 0x1e6   :  { %799 = vadd.xlane.f32.xlu1 %v1745_v1  ;;  %vm1790_vm0 = vmand %vm1921_vm11, %vm476_vm7 }
 0x1e7   :  { %801 = vadd.xlane.f32.xlu0 %v1749_v3  ;;  %vm510_vm10 = vmand %vm1790_vm0, %vm379_vm5  ;;  %vm1924_vm5 = vcmask 261120  }
 0x1e8   :  { %vm1925_vm8 = vmmov %vm1924_vm5 }
 0x1ea   :  { %803 = vadd.xlane.f32.xlu1 %v1758_v54 }
 0x1ee   :  { %805 = vadd.xlane.f32.xlu1 %v1764_v55 }
 0x247   :  { %v596_v56 = vpop.xlane.xlu0 %595 }
 0x248   :  { %v627_v6 = vadd.f32 %v1443_v26, %v596_v56 }
 0x24a   :  { %v643_v4 = vmax.f32 %v627_v6, 1e-30 }
 0x24b   :  { %v600_v9 = vpop.xlane.xlu0 %599 }
 0x24c   :  { %1176 = vlog2.f32 %v643_v4  ;;  %v629_v12 = vadd.f32 %v1460_v33, %v600_v9 }
 0x24e   :  { %v645_v15 = vmax.f32 %v629_v12, 1e-30 }
 0x24f   :  { %v602_v16 = vpop.xlane.xlu0 %601  ;;  %v598_v19 = vpop.xlane.xlu1 %597 }
 0x250   :  { %1178 = vlog2.f32 %v645_v15  ;;  %v630_v0 = vadd.f32 %v1489_v44, %v602_v16  ;;  %v628_v20 = vadd.f32 %v1498_v46, %v598_v19  ;;  %v1042_v15 = vsel %vm509_vm3, 1.0, %v1250_v45 }
 0x252   :  { %v646_v24 = vmax.f32 %v630_v0, 1e-30  ;;  %v644_v28 = vmax.f32 %v628_v20, 1e-30 }
 0x254   :  { %1180 = vlog2.f32 %v646_v24  ;;  %v1043_v24 = vsel %vm510_vm10, 1.0, %v1250_v45 }
 0x255   :  { %1182 = vlog2.f32 %v644_v28 }
 0x256   :  { %v1177_v26 = vpop.eup %1176 }
 0x257   :  { %v660_v33 = vmul.f32 0.6931472, %v1177_v26  ;;  %v604_v38 = vpop.xlane.xlu1 %603 }
 0x258   :  { %v606_v39 = vpop.xlane.xlu0 %605  ;;  %v631_v40 = vadd.f32 %v1555_v57, %v604_v38 }
 0x259   :  { %v632_v44 = vadd.f32 %v1563_v58, %v606_v39  ;;  %v691_v46 = vsub.f32 %v1416_v10, %v660_v33 }
 0x25a   :  { %v1179_v42 = vpop.eup %1178  ;;  %v647_v59 = vmax.f32 %v631_v40, 1e-30 }
 0x25b   :  { %v664_v47 = vmul.f32 0.6931472, %v1179_v42  ;;  %v648_v60 = vmax.f32 %v632_v44, 1e-30  ;;  %v608_v43 = vpop.xlane.xlu1 %607  ;;  %v739_v61 = vmul.f32 %v1681_v48, %v691_v46 }
 0x25c   :  { %1184 = vlog2.f32 %v647_v59  ;;  %v610_v2 = vpop.xlane.xlu0 %609  ;;  %v633_v57 = vadd.f32 %v1572_v8, %v608_v43 }
 0x25d   :  { %1186 = vlog2.f32 %v648_v60  ;;  %v634_v10 = vadd.f32 %v1585_v14, %v610_v2  ;;  %755 = vadd.xlane.f32.xlu1 %v739_v61  ;;  %v693_v58 = vsub.f32 %v1414_v7, %v664_v47 }
 0x25e   :  { %v1181_v5 = vpop.eup %1180  ;;  %v649_v48 = vmax.f32 %v633_v57, 1e-30 }
 0x25f   :  { %v1183_v56 = vpop.eup %1182  ;;  %v666_v8 = vmul.f32 0.6931472, %v1181_v5  ;;  %v650_v6 = vmax.f32 %v634_v10, 1e-30  ;;  %v612_v4 = vpop.xlane.xlu1 %611  ;;  %v741_v14 = vmul.f32 %v1708_v51, %v693_v58 }
 0x260   :  { %v662_v9 = vmul.f32 0.6931472, %v1183_v56  ;;  %1188 = vlog2.f32 %v649_v48  ;;  %v614_v12 = vpop.xlane.xlu0 %613  ;;  %v635_v7 = vadd.f32 %v1612_v18, %v612_v4 }
 0x261   :  { %1190 = vlog2.f32 %v650_v6  ;;  %v636_v17 = vadd.f32 %v1618_v23, %v614_v12  ;;  %807 = vadd.xlane.f32.xlu1 %v1042_v15  ;;  %759 = vadd.xlane.f32.xlu0 %v741_v14  ;;  %v694_v11 = vsub.f32 %v1420_v13, %v666_v8 }
 0x262   :  { %v651_v51 = vmax.f32 %v635_v7, 1e-30  ;;  %v692_v18 = vsub.f32 %v1430_v21, %v662_v9 }
 0x263   :  { %v652_v16 = vmax.f32 %v636_v17, 1e-30  ;;  %v616_v0 = vpop.xlane.xlu1 %615  ;;  %v742_v19 = vmul.f32 %v1713_v36, %v694_v11 }
 0x264   :  { %1192 = vlog2.f32 %v651_v51  ;;  %v618_v20 = vpop.xlane.xlu0 %617  ;;  %v637_v23 = vadd.f32 %v1642_v31, %v616_v0  ;;  %v740_v36 = vmul.f32 %v1687_v49, %v692_v18 }
 0x265   :  { %1194 = vlog2.f32 %v652_v16  ;;  %v638_v13 = vadd.f32 %v1647_v32, %v618_v20  ;;  %761 = vadd.xlane.f32.xlu0 %v742_v19  ;;  %809 = vadd.xlane.f32.xlu1 %v1043_v24 }
 0x266   :  { %v1185_v22 = vpop.eup %1184  ;;  %v653_v25 = vmax.f32 %v637_v23, 1e-30 }
 0x267   :  { %v1187_v28 = vpop.eup %1186  ;;  %v668_v26 = vmul.f32 0.6931472, %v1185_v22  ;;  %v654_v30 = vmax.f32 %v638_v13, 1e-30 }
 0x268   :  { %v670_v33 = vmul.f32 0.6931472, %v1187_v28  ;;  %1196 = vlog2.f32 %v653_v25 }
 0x269   :  { %1198 = vlog2.f32 %v654_v30  ;;  %757 = vadd.xlane.f32.xlu0 %v740_v36  ;;  %v695_v21 = vsub.f32 %v1464_v34, %v668_v26 }
 0x26a   :  { %v1189_v31 = vpop.eup %1188  ;;  %v696_v39 = vsub.f32 %v1466_v35, %v670_v33 }
 0x26b   :  { %v1191_v45 = vpop.eup %1190  ;;  %v672_v38 = vmul.f32 0.6931472, %v1189_v31  ;;  %v743_v32 = vmul.f32 %v1730_v63, %v695_v21 }
 0x26c   :  { %v674_v40 = vmul.f32 0.6931472, %v1191_v45  ;;  %v744_v59 = vmul.f32 %v1734_v53, %v696_v39 }
 0x26d   :  { %763 = vadd.xlane.f32.xlu0 %v743_v32  ;;  %v697_v44 = vsub.f32 %v1445_v27, %v672_v38 }
 0x26e   :  { %v1193_v46 = vpop.eup %1192  ;;  %v698_v34 = vsub.f32 %v1457_v29, %v674_v40 }
 0x26f   :  { %v1195_v42 = vpop.eup %1194  ;;  %v676_v49 = vmul.f32 0.6931472, %v1193_v46  ;;  %v745_v47 = vmul.f32 %v1745_v1, %v697_v44 }
 0x270   :  { %v678_v60 = vmul.f32 0.6931472, %v1195_v42  ;;  %v746_v2 = vmul.f32 %v1749_v3, %v698_v34  ;;  %v1150_v3 = vld [vmem:[%s1887_s0 + $0x30] sm:$0xff]  }
 0x271   :  { %765 = vadd.xlane.f32.xlu0 %v744_v59  ;;  %767 = vadd.xlane.f32.xlu1 %v745_v47  ;;  %v699_v63 = vsub.f32 %v1471_v37, %v676_v49 }
 0x272   :  { %v1197_v43 = vpop.eup %1196  ;;  %v700_v57 = vsub.f32 %v1485_v41, %v678_v60  ;;  %v1151_v41 = vld [vmem:[%s1887_s0 + $0x38] sm:$0xff]   ;;  %1092 = vmatprep.mubr.msk.bf16.mxu1 %vm1924_vm5, %v1150_v3  ;;  %s1251_s0 = smov [#allocation2]  }
 0x273   :  { %v1199_v35 = vpop.eup %1198  ;;  %v680_v61 = vmul.f32 0.6931472, %v1197_v43  ;;  %v747_v27 = vmul.f32 %v1758_v54, %v699_v63  ;;  %1093 = vmatmul.mubr.msk.bf16.gmra.mrb[4].mxu1 %vm1925_vm8, %v1151_v41  ;;  %s997_s14 = sshll.u32 %s1251_s0, 4  ;;  %s998_s14 = int_to_ptr.vmem [resolvable:$true] %s997_s14 }
 0x274   :  { %v682_v10 = vmul.f32 0.6931472, %v1199_v35  ;;  %v748_v29 = vmul.f32 %v1764_v55, %v700_v57  ;;  %s1224_s17 = scalar_lea.vmem %s998_s14, 128  ;;  %p1229_p1 = scmp.lt.s32.totalorder %s998_s14, %s998_s14 }
 0x275   :  { %769 = vadd.xlane.f32.xlu0 %v746_v2  ;;  %771 = vadd.xlane.f32.xlu1 %v747_v27  ;;  %v701_v53 = vsub.f32 %v1510_v50, %v680_v61  ;;  %v788_v50 = vpop.xlane.xlu1 %787  ;;  %p1225_p0 = scmp.ne.s32.totalorder %s998_s14, %s1224_s17  ;;  %p1230_p2 = scmp.lt.s32.totalorder %s1224_s17, %s1224_s17 }
 0x276   :  { %v702_v58 = vsub.f32 %v1516_v52, %v682_v10  ;;  %v790_v52 = vpop.xlane.xlu0 %789  ;;  %v819_v48 = vmax.f32 %v788_v50, 1.0  ;;  %vm899_vm1 = vcmp.gt.f32.partialorder %v788_v50, 0.0 }
 0x277   :  { %v749_v1 = vmul.f32 %v1042_v15, %v701_v53  ;;  %v820_v14 = vmax.f32 %v790_v52, 1.0  ;;  %vm900_vm2 = vcmp.gt.f32.partialorder %v790_v52, 0.0  ;;  %p1231_p3 = por %p1230_p2, %p1229_p1 }
 0x278   :  { %v750_v37 = vmul.f32 %v1043_v24, %v702_v58  ;;  %1200 = vrcp.f32 %v819_v48 }
 0x279   :  { %773 = vadd.xlane.f32.xlu0 %v748_v29  ;;  %775 = vadd.xlane.f32.xlu1 %v749_v1  ;;  %v792_v54 = vpop.xlane.xlu1 %791  ;;  %p1232_p4 = pnand %p1231_p3, %p1225_p0 }
 0x27a   :  { %v794_v62 = vpop.xlane.xlu0 %793  ;;  %v821_v8 = vmax.f32 %v792_v54, 1.0  ;;  %vm901_vm13 = vcmp.gt.f32.partialorder %v792_v54, 0.0 }
 0x27b   :  { %v822_v4 = vmax.f32 %v794_v62, 1.0  ;;  %vm902_vm12 = vcmp.gt.f32.partialorder %v794_v62, 0.0 }
 0x27c   :  { %1202 = vrcp.f32 %v821_v8 }
 0x27d   :  { %777 = vadd.xlane.f32.xlu0 %v750_v37  ;;  %v1831_v55 = vpop.xlane.xlu1 %795  ;;  %1204 = vrcp.f32 %v822_v4 }
 0x27e   :  { %v1837_v6 = vpop.xlane.xlu0 %797  ;;  %1206 = vrcp.f32 %v820_v14  ;;  %v823_v7 = vmax.f32 %v1831_v55, 1.0  ;;  %vm903_vm14 = vcmp.gt.f32.partialorder %v1831_v55, 0.0 }
 0x27f   :  { %v824_v11 = vmax.f32 %v1837_v6, 1.0  ;;  %vm904_vm4 = vcmp.gt.f32.partialorder %v1837_v6, 0.0 }
 0x280   :  { %1208 = vrcp.f32 %v823_v7 }
 0x281   :  { %v1833_v5 = vpop.xlane.xlu1 %799  ;;  %1210 = vrcp.f32 %v824_v11 }
 0x282   :  { %v1841_v12 = vpop.xlane.xlu0 %801  ;;  %v1201_v51 = vpop.eup %1200  ;;  %v825_v16 = vmax.f32 %v1833_v5, 1.0  ;;  %vm905_vm9 = vcmp.gt.f32.partialorder %v1833_v5, 0.0 }
 0x283   :  { %v826_v13 = vmax.f32 %v1841_v12, 1.0  ;;  %vm906_vm6 = vcmp.gt.f32.partialorder %v1841_v12, 0.0 }
 0x284   :  { %1212 = vrcp.f32 %v825_v16 }
 0x285   :  { %v1835_v56 = vpop.xlane.xlu1 %803  ;;  %1214 = vrcp.f32 %v826_v13 }
 0x286   :  { %v1203_v19 = vpop.eup %1202  ;;  %v827_v22 = vmax.f32 %v1835_v56, 1.0  ;;  %vm907_vm7 = vcmp.gt.f32.partialorder %v1835_v56, 0.0 }
 0x287   :  { %v1205_v24 = vpop.eup %1204 }
 0x288   :  { %v1207_v26 = vpop.eup %1206  ;;  %1216 = vrcp.f32 %v827_v22 }
 0x289   :  { %v1839_v9 = vpop.xlane.xlu1 %805 }
 0x28a   :  { %v828_v36 = vmax.f32 %v1839_v9, 1.0  ;;  %v1209_v40 = vpop.eup %1208  ;;  %vm908_vm3 = vcmp.gt.f32.partialorder %v1839_v9, 0.0 }
 0x28b   :  { %v1211_v60 = vpop.eup %1210 }
 0x28c   :  { %1218 = vrcp.f32 %v828_v36 }
 0x28e   :  { %v1213_v61 = vpop.eup %1212 }
 0x28f   :  { %v1215_v50 = vpop.eup %1214 }
 0x292   :  { %v1217_v62 = vpop.eup %1216 }
 0x2ea   :  { %v756_v15 = vpop.xlane.xlu1 %755 }
 0x2eb   :  { %v851_v0 = vmul.f32 %v1201_v51, %v756_v15 }
 0x2ed   :  { %v867_v25 = vmul.f32 -1.4285715, %v851_v0 }
 0x2ee   :  { %v760_v17 = vpop.xlane.xlu0 %759  ;;  %v1846_v23 = vpop.xlane.xlu1 %807 }
 0x2ef   :  { %v853_v20 = vmul.f32 %v1203_v19, %v760_v17  ;;  %v829_v31 = vmax.f32 %v1846_v23, 1.0  ;;  %v931_v45 = vsel %vm899_vm1, %v867_v25, 0.0  ;;  %v1219_v17 = vpop.eup %1218  ;;  %vm909_vm11 = vcmp.gt.f32.partialorder %v1846_v23, 0.0 }
 0x2f0   :  { %v948_v59 = vsel %vm947_vm15, %v931_v45, 0.0 }
 0x2f1   :  { %v869_v33 = vmul.f32 -1.4285715, %v853_v20  ;;  %1220 = vrcp.f32 %v829_v31 }
 0x2f2   :  { %v762_v18 = vpop.xlane.xlu0 %761  ;;  %v1852_v32 = vpop.xlane.xlu1 %809 }
 0x2f3   :  { %v854_v28 = vmul.f32 %v1205_v24, %v762_v18  ;;  %v933_v46 = vsel %vm901_vm13, %v869_v33, 0.0  ;;  %v830_v47 = vmax.f32 %v1852_v32, 1.0  ;;  %vm910_vm0 = vcmp.gt.f32.partialorder %v1852_v32, 0.0 }
 0x2f4   :  { %v951_v2 = vsel %vm947_vm15, %v933_v46, 0.0 }
 0x2f5   :  { %v870_v38 = vmul.f32 -1.4285715, %v854_v28  ;;  %1222 = vrcp.f32 %v830_v47 }
 0x2f6   :  { %v758_v30 = vpop.xlane.xlu0 %757 }
 0x2f7   :  { %v852_v21 = vmul.f32 %v1207_v26, %v758_v30  ;;  %v934_v63 = vsel %vm902_vm12, %v870_v38, 0.0 }
 0x2f8   :  { %v953_v58 = vsel %vm947_vm15, %v934_v63, 0.0 }
 0x2f9   :  { %v868_v39 = vmul.f32 -1.4285715, %v852_v21 }
 0x2fa   :  { %v764_v44 = vpop.xlane.xlu0 %763 }
 0x2fb   :  { %v932_v42 = vsel %vm900_vm2, %v868_v39, 0.0  ;;  %v855_v49 = vmul.f32 %v1209_v40, %v764_v44  ;;  %v1221_v16 = vpop.eup %1220 }
 0x2fc   :  { %v949_v34 = vsel %vm947_vm15, %v932_v42, 0.0 }
 0x2fd   :  { %v950_v43 = vadd.f32 %v949_v34, %v948_v59  ;;  %v871_v35 = vmul.f32 -1.4285715, %v855_v49 }
 0x2fe   :  { %v766_v27 = vpop.xlane.xlu0 %765  ;;  %v768_v57 = vpop.xlane.xlu1 %767 }
 0x2ff   :  { %v952_v10 = vadd.f32 %v951_v2, %v950_v43  ;;  %v935_v53 = vsel %vm903_vm14, %v871_v35, 0.0  ;;  %v856_v29 = vmul.f32 %v1211_v60, %v766_v27  ;;  %v857_v1 = vmul.f32 %v1213_v61, %v768_v57  ;;  %v1223_v36 = vpop.eup %1222 }
 0x300   :  { %v955_v54 = vsel %vm947_vm15, %v935_v53, 0.0 }
 0x301   :  { %v954_v37 = vadd.f32 %v953_v58, %v952_v10  ;;  %v872_v3 = vmul.f32 -1.4285715, %v856_v29  ;;  %v873_v41 = vmul.f32 -1.4285715, %v857_v1 }
 0x302   :  { %v770_v55 = vpop.xlane.xlu0 %769  ;;  %v772_v52 = vpop.xlane.xlu1 %771 }
 0x303   :  { %v956_v48 = vadd.f32 %v955_v54, %v954_v37  ;;  %v936_v8 = vsel %vm904_vm4, %v872_v3, 0.0  ;;  %v937_v4 = vsel %vm905_vm9, %v873_v41, 0.0  ;;  %v858_v14 = vmul.f32 %v1215_v50, %v770_v55 }
 0x304   :  { %v957_v7 = vsel %vm947_vm15, %v936_v8, 0.0  ;;  %v859_v15 = vmul.f32 %v1217_v62, %v772_v52  ;;  %v959_v5 = vsel %vm947_vm15, %v937_v4, 0.0 }
 0x305   :  { %v958_v11 = vadd.f32 %v957_v7, %v956_v48  ;;  %v874_v51 = vmul.f32 -1.4285715, %v858_v14 }
 0x306   :  { %v875_v6 = vmul.f32 -1.4285715, %v859_v15  ;;  %v774_v0 = vpop.xlane.xlu0 %773  ;;  %v776_v19 = vpop.xlane.xlu1 %775 }
 0x307   :  { %v960_v18 = vadd.f32 %v959_v5, %v958_v11  ;;  %v938_v20 = vsel %vm906_vm6, %v874_v51, 0.0  ;;  %v860_v24 = vmul.f32 %v1219_v17, %v774_v0  ;;  %v861_v13 = vmul.f32 %v1221_v16, %v776_v19 }
 0x308   :  { %v961_v22 = vsel %vm947_vm15, %v938_v20, 0.0  ;;  %v939_v25 = vsel %vm907_vm7, %v875_v6, 0.0 }
 0x309   :  { %v962_v28 = vadd.f32 %v961_v22, %v960_v18  ;;  %v876_v26 = vmul.f32 -1.4285715, %v860_v24  ;;  %v877_v30 = vmul.f32 -1.4285715, %v861_v13  ;;  %v963_v56 = vsel %vm947_vm15, %v939_v25, 0.0 }
 0x30a   :  { %v778_v12 = vpop.xlane.xlu0 %777 }
 0x30b   :  { %v964_v33 = vadd.f32 %v963_v56, %v962_v28  ;;  %v940_v21 = vsel %vm908_vm3, %v876_v26, 0.0  ;;  %v941_v31 = vsel %vm909_vm11, %v877_v30, 0.0  ;;  %v862_v45 = vmul.f32 %v1223_v36, %v778_v12 }
 0x30c   :  { %v965_v38 = vsel %vm947_vm15, %v940_v21, 0.0  ;;  %v967_v44 = vsel %vm947_vm15, %v941_v31, 0.0 }
 0x30d   :  { %v966_v39 = vadd.f32 %v965_v38, %v964_v33  ;;  %v878_v40 = vmul.f32 -1.4285715, %v862_v45 }
 0x30f   :  { %v942_v46 = vsel %vm910_vm0, %v878_v40, 0.0  ;;  %v968_v42 = vadd.f32 %v967_v44, %v966_v39 }
 0x310   :  { %v969_v9 = vsel %vm947_vm15, %v942_v46, 0.0 }
 0x311   :  { %v970_v23 = vadd.f32 %v969_v9, %v968_v42 }
 0x313   :  { %979 = vadd.xlane.f32.xlu1 %v970_v23 }
 0x346   :  { %v1094_v49 = vpop.f32.mrb[4].mxu1 }
 0x347   :  { %v264_v59 = vpop.f32.mrb[5].mxu1 }
 0x348   :  { %v1095_v47 = vpop.f32.mrb[6].mxu1 }
 0x349   :  { %v267_v34 = vpop.f32.mrb[7].mxu1 }
 0x3a0   :  { %v980_v60 = vpop.xlane.xlu1 %979 }
 0x3a1   :  { %v981_v63 = vrot.slane %v980_v60, 4 }
 0x3a3   :  { %v982_v43 = vadd.f32 %v981_v63, %v980_v60 }
 0x3a5   :  { %v983_v35 = vrot.slane %v982_v43, 2 }
 0x3a7   :  { %v984_v61 = vadd.f32 %v983_v35, %v982_v43 }
 0x3a9   :  { %v985_v2 = vrot.slane %v984_v61, 1 }
 0x3ab   :  { %v986_v27 = vadd.f32 %v985_v2, %v984_v61 }
 0x3ad   :  { %1128 = vpush %v986_v27 }
 0x3de   :  { %s1129_s15 = spop %1128 }
 0x3df   :  { %s988_s16 = smul.f32 0.010416667, %s1129_s15 }
 0x3e1   :  { %v989_v32 = vstv %s988_s16 }
 0x3e2   :  { %990 = vst [vmem:[#allocation2] sm:$0xff] %v989_v32 }
 0x3e3   :  { %1235 = shalt.err (!%p1232_p4)
}
 0x3e4   :  { %s1236_s20 = scalar_lea.hbm %s1890_s3, 128 }
 0x3e5   :  { %p1237_p5 = scmp.ne.s32.totalorder %s1890_s3, %s1236_s20  ;;  %p1240_p6 = scmp.lt.u32.totalorder %s1236_s20, %s1890_s3 }
 0x3e7   :  { %p1242_p7 = pnand %p1240_p6, %p1237_p5 }
 0x3e9   :  { %1245 = shalt.err (!%p1242_p7)
}
 0x3ea   :  { %1000 = dma.vmem_to_hbm [thread:$0]  %s998_s14, 128, %s1890_s3, [#allocation3]  }
 0x3eb   :  { %1246 = dma.done.wait [#allocation3], 128  }
 0x3ec   :  { %1247 = vsyncadd [#allocation3], 4294967168 }
 0x3ed   :  { %1004 = vsyncpa [#allocation3], 1 }

</bundles_post_ra>
